<compile_context>
chip_gen: v6e
topology: v6e:2x2x1
jax: 0.10.0
libtpu: 0.0.40
codegen_flags: <defaults>
</compile_context>

<pallas_src>
import functools
import numpy as np
import jax
import jax.numpy as jnp
from jax.experimental import pallas as pl
from jax.experimental.pallas import tpu as pltpu


def _round_up(x, m):
    return ((x + m - 1) // m) * m


# -----------------------------------------------------------------------------
# Deterministic parameter init (matches nn.init.orthogonal_(gain=sqrt(2)), zero bias)
# -----------------------------------------------------------------------------
def orthogonal_init(key, out_features, in_features, gain):
    """Mimic torch.nn.init.orthogonal_ on a (out, in) weight, return (in, out)."""
    a = jax.random.normal(key, (out_features, in_features), dtype=jnp.float32)
    transpose = out_features < in_features
    if transpose:
        a = a.T
    q, r = jnp.linalg.qr(a)
    d = jnp.sign(jnp.diagonal(r))
    q = q * d[None, :]
    if transpose:
        q = q.T
    return (gain * q).T.astype(jnp.float32)  # stored as (in, out)


def make_params(key, obs_dim, act_dim, hidden_size=64):
    gain = float(np.sqrt(2.0))
    k = jax.random.split(key, 5)
    return {
        "w1": orthogonal_init(k[0], hidden_size, obs_dim, gain),
        "b1": jnp.zeros((1, hidden_size), jnp.float32),
        "w2": orthogonal_init(k[1], hidden_size, hidden_size, gain),
        "b2": jnp.zeros((1, hidden_size), jnp.float32),
        "wm": orthogonal_init(k[2], act_dim, hidden_size, gain),
        "bm": jnp.zeros((1, act_dim), jnp.float32),
        "wc1": orthogonal_init(k[3], hidden_size // 2, hidden_size, gain),
        "bc1": jnp.zeros((1, hidden_size // 2), jnp.float32),
        "wc2": orthogonal_init(k[4], 1, hidden_size // 2, gain),
        "bc2": jnp.zeros((1, 1), jnp.float32),
        "actor_logstd": jnp.zeros((act_dim,), jnp.float32),
    }


# -----------------------------------------------------------------------------
# One-time host-side parameter prep: fuse heads to one lane-aligned N=128 weight,
# cast MXU operands to bf16.  w1 stays at its true (obs_dim, hidden) K — no padding.
# -----------------------------------------------------------------------------
def prepare_inference_params(p, matmul_dtype=jnp.bfloat16):
    obs_dim, hidden = p["w1"].shape
    act_dim = p["wm"].shape[1]
    ch = p["wc1"].shape[1]                              # hidden // 2
    n_pad = _round_up(act_dim + ch, 128)                # fused head width (lane-dense)

    # fused head: cols [0, act_dim) = actor_mean weights, [act_dim, act_dim+ch) = critic L1
    wh = jnp.zeros((hidden, n_pad), jnp.float32)
    wh = wh.at[:, :act_dim].set(p["wm"]).at[:, act_dim:act_dim + ch].set(p["wc1"])
    bh = jnp.zeros((1, n_pad), jnp.float32)
    bh = bh.at[:, :act_dim].set(p["bm"]).at[:, act_dim:act_dim + ch].set(p["bc1"])

    # final critic layer as a zero-padded row (VPU multiply + lane reduce in the kernel)
    wc2_row = jnp.zeros((1, n_pad), jnp.float32).at[:, act_dim:act_dim + ch].set(p["wc2"][:, 0])

    return {
        "w1": p["w1"].astype(matmul_dtype),             # (obs_dim, hidden), true K
        "b1": p["b1"],
        "w2": p["w2"].astype(matmul_dtype),
        "b2": p["b2"],
        "wh": wh.astype(matmul_dtype),
        "bh": bh,
        "wc2_row": wc2_row,
        "bc2": p["bc2"],
        "actor_logstd": p["actor_logstd"],
    }


# -----------------------------------------------------------------------------
# Pallas kernel: fused MLP forward (trunk + fused actor/critic heads), per batch tile
# -----------------------------------------------------------------------------
def _actor_critic_kernel(obs_ref, w1_ref, b1_ref, w2_ref, b2_ref,
                         wh_ref, bh_ref, wc2_ref, bc2_ref,
                         mean_ref, value_ref, *, act_dim):
    mdt = w1_ref.dtype  # matmul (MXU) dtype, e.g. bf16; accumulation + VPU math stay f32

    # trunk: ReLU(obs @ W1 + b1); ReLU(h1 @ W2 + b2)   (obs cast to bf16 in-kernel)
    h1 = jnp.dot(obs_ref[...].astype(mdt), w1_ref[...],
                 preferred_element_type=jnp.float32) + b1_ref[...]
    h1 = jnp.maximum(h1, 0.0)
    h2 = jnp.dot(h1.astype(mdt), w2_ref[...],
                 preferred_element_type=jnp.float32) + b2_ref[...]
    h2 = jnp.maximum(h2, 0.0)                                           # (TB, hidden) f32

    # fused heads: one lane-aligned N=128 MXU pass (actor mean cols + critic hidden cols)
    heads = jnp.dot(h2.astype(mdt), wh_ref[...],
                    preferred_element_type=jnp.float32) + bh_ref[...]   # (TB, 128) f32

    # actor mean: plain lane slice of the fused head (no masking epilogue)
    mean_ref[...] = heads[:, :act_dim]

    # critic output: relu + elementwise mul + lane reduce (wc2_row is zero outside critic cols)
    value_ref[...] = jnp.sum(jnp.maximum(heads, 0.0) * wc2_ref[...],
                             axis=-1, keepdims=True) + bc2_ref[...]


def actor_critic_forward(obs, params, *, act_dim, block_b=2048):
    """Returns (action_mean, action_std, value) — same semantics as ActorCritic.forward."""
    B, obs_dim = obs.shape
    obs_dim_w, hidden = params["w1"].shape
    assert obs_dim == obs_dim_w
    n_pad = params["wh"].shape[1]

    # batch tile: >=2 tiles whenever B > 8 (keeps both v7x TCs busy), capped at block_b,
    # multiple of 8 sublanes.  block_b=2048 keeps double-buffered tiles well under the
    # 32 MiB scoped VMEM default on all generations.
    tb = max(8, min(block_b, _round_up(-(-B // 2), 8)))
    b_pad = _round_up(B, tb)
    grid = (b_pad // tb,)

    # only a cheap batch pad on the narrow (B, obs_dim) f32 array (no feature pad / cast)
    obs_p = obs.astype(jnp.float32)
    if b_pad != B:
        obs_p = jnp.pad(obs_p, ((0, b_pad - B), (0, 0)))

    def batch_spec(shape):
        return pl.BlockSpec(shape, lambda i: (i, 0))

    def const_spec(shape):
        return pl.BlockSpec(shape, lambda i: (0, 0))    # weights stay VMEM-resident

    weight_bytes = sum(int(np.prod(params[k].shape)) * params[k].dtype.itemsize
                       for k in ("w1", "b1", "w2", "b2", "wh", "bh", "wc2_row", "bc2"))
    cost = pl.CostEstimate(
        flops=2 * b_pad * (obs_dim * hidden + hidden * hidden + hidden * n_pad) + 3 * b_pad * n_pad,
        transcendentals=0,
        bytes_accessed=b_pad * obs_dim * 4 + weight_bytes + b_pad * (act_dim + 1) * 4,
    )

    mean_p, value_p = pl.pallas_call(
        functools.partial(_actor_critic_kernel, act_dim=act_dim),
        out_shape=(jax.ShapeDtypeStruct((b_pad, act_dim), jnp.float32),
                   jax.ShapeDtypeStruct((b_pad, 1), jnp.float32)),
        grid=grid,
        in_specs=[
            batch_spec((tb, obs_dim)),        # obs tile (true K, f32, contiguous DMA)
            const_spec((obs_dim, hidden)),    # w1
            const_spec((1, hidden)),          # b1
            const_spec((hidden, hidden)),     # w2
            const_spec((1, hidden)),          # b2
            const_spec((hidden, n_pad)),      # fused head weights
            const_spec((1, n_pad)),           # fused head bias
            const_spec((1, n_pad)),           # wc2 row (padded)
            const_spec((1, 1)),               # bc2
        ],
        out_specs=(batch_spec((tb, act_dim)),  # mean (narrow f32 writeback)
                   batch_spec((tb, 1))),       # value (f32, full accumulation precision)
        compiler_params=pltpu.CompilerParams(dimension_semantics=("parallel",)),
        cost_estimate=cost,
    )(obs_p, params["w1"], params["b1"], params["w2"], params["b2"],
      params["wh"], params["bh"], params["wc2_row"], params["bc2"])

    mean = mean_p[:B]
    value = value_p[:B, 0]
    action_std = jnp.exp(params["actor_logstd"])        # parameter-only transform (fuses under jit)
    return mean, action_std, value


# -----------------------------------------------------------------------------
# Pure-JAX reference.  matmul_dtype=float32 reproduces the PyTorch module exactly;
# matmul_dtype=bfloat16 mimics the kernel's bf16-MXU / f32-accumulate numerics.
# -----------------------------------------------------------------------------
def reference_forward(obs, p, matmul_dtype=jnp.float32):
    mdt = matmul_dtype

    def dot(x, w):
        return jnp.dot(x.astype(mdt), w.astype(mdt), preferred_element_type=jnp.float32)

    h = jnp.maximum(dot(obs, p["w1"]) + p["b1"], 0.0)
    h = jnp.maximum(dot(h, p["w2"]) + p["b2"], 0.0)
    mean = dot(h, p["wm"]) + p["bm"]
    c = jnp.maximum(dot(h, p["wc1"]) + p["bc1"], 0.0)
    value = (jnp.dot(c, p["wc2"]) + p["bc2"])[:, 0]      # final layer kept in f32 (as in kernel)
    return mean, jnp.exp(p["actor_logstd"]), value


if __name__ == "__main__":
    key = jax.random.PRNGKey(0)
    k_param, k_obs_small, k_obs_big = jax.random.split(key, 3)

    obs_dim, act_dim, hidden = 16, 8, 64
    raw_params = make_params(k_param, obs_dim, act_dim, hidden)
    params = prepare_inference_params(raw_params, matmul_dtype=jnp.bfloat16)

    fwd = jax.jit(functools.partial(actor_critic_forward, act_dim=act_dim, block_b=2048))

    for B, k_obs in ((8, k_obs_small), (333, k_obs_big)):
        obs = jax.random.normal(k_obs, (B, obs_dim), dtype=jnp.float32)
        mean, std, value = fwd(obs, params)
        jax.block_until_ready((mean, std, value))

        assert mean.shape == (B, act_dim)
        assert std.shape == (act_dim,)
        assert value.shape == (B,)

        # structural check vs a reference that mimics the kernel's bf16 MXU inputs
        m_mean, m_std, m_value = reference_forward(obs, raw_params, matmul_dtype=jnp.bfloat16)
        np.testing.assert_allclose(np.asarray(mean), np.asarray(m_mean), rtol=2e-3, atol=2e-3)
        np.testing.assert_allclose(np.asarray(std), np.asarray(m_std), rtol=1e-6, atol=1e-6)
        np.testing.assert_allclose(np.asarray(value), np.asarray(m_value), rtol=2e-3, atol=2e-3)

        # numeric sanity vs the exact f32 PyTorch-equivalent forward (bf16 MXU tolerance)
        f_mean, _, f_value = reference_forward(obs, raw_params, matmul_dtype=jnp.float32)
        np.testing.assert_allclose(np.asarray(mean), np.asarray(f_mean), rtol=5e-2, atol=5e-2)
        np.testing.assert_allclose(np.asarray(value), np.asarray(f_value), rtol=5e-2, atol=5e-2)

    print("KERNEL_OK")
</pallas_src>

<mosaic_0001>
module attributes {stable_mosaic.version = 11 : i64} {
  func.func @_actor_critic_kernel(%arg0: i32, %arg1: memref<8x16xf32, #tpu.memory_space<vmem>>, %arg2: memref<16x64xbf16, #tpu.memory_space<vmem>>, %arg3: memref<1x64xf32, #tpu.memory_space<vmem>>, %arg4: memref<64x64xbf16, #tpu.memory_space<vmem>>, %arg5: memref<1x64xf32, #tpu.memory_space<vmem>>, %arg6: memref<64x128xbf16, #tpu.memory_space<vmem>>, %arg7: memref<1x128xf32, #tpu.memory_space<vmem>>, %arg8: memref<1x128xf32, #tpu.memory_space<vmem>>, %arg9: memref<1x1xf32, #tpu.memory_space<vmem>>, %arg10: memref<8x8xf32, #tpu.memory_space<vmem>>, %arg11: memref<8x1xf32, #tpu.memory_space<vmem>>) attributes {dimension_semantics = [#tpu.dimension_semantics<parallel>], iteration_bounds = array<i64: 1>, scalar_prefetch = 0 : i64, scratch_operands = 0 : i64, tpu.core_type = #tpu.core_type<tc>, window_params = [{transform_indices = @transform_0, window_bounds = array<i64: 8, 16>}, {pipeline_mode = #tpu.pipeline_mode<synchronous>, transform_indices = @transform_1, window_bounds = array<i64: 16, 64>}, {pipeline_mode = #tpu.pipeline_mode<synchronous>, transform_indices = @transform_2, window_bounds = array<i64: 1, 64>}, {pipeline_mode = #tpu.pipeline_mode<synchronous>, transform_indices = @transform_3, window_bounds = array<i64: 64, 64>}, {pipeline_mode = #tpu.pipeline_mode<synchronous>, transform_indices = @transform_4, window_bounds = array<i64: 1, 64>}, {pipeline_mode = #tpu.pipeline_mode<synchronous>, transform_indices = @transform_5, window_bounds = array<i64: 64, 128>}, {pipeline_mode = #tpu.pipeline_mode<synchronous>, transform_indices = @transform_6, window_bounds = array<i64: 1, 128>}, {pipeline_mode = #tpu.pipeline_mode<synchronous>, transform_indices = @transform_7, window_bounds = array<i64: 1, 128>}, {pipeline_mode = #tpu.pipeline_mode<synchronous>, transform_indices = @transform_8, window_bounds = array<i64: 1, 1>}, {transform_indices = @transform_9, window_bounds = array<i64: 8, 8>}, {transform_indices = @transform_10, window_bounds = array<i64: 8, 1>}]} {
    %c0 = arith.constant 0 : index
    %c0_0 = arith.constant 0 : index
    %0 = vector.load %arg1[%c0, %c0_0] : memref<8x16xf32, #tpu.memory_space<vmem>>, vector<8x16xf32>
    %1 = arith.truncf %0 : vector<8x16xf32> to vector<8x16xbf16>
    %c0_1 = arith.constant 0 : index
    %c0_2 = arith.constant 0 : index
    %2 = vector.load %arg2[%c0_1, %c0_2] : memref<16x64xbf16, #tpu.memory_space<vmem>>, vector<16x64xbf16>
    %cst = arith.constant dense<0.000000e+00> : vector<8x64xf32>
    %3 = tpu.matmul %1, %2, %cst {dimension_numbers = #tpu.dot_dimension_numbers<[1], [0], [0], [1], [0, 0, 1, 1], [], []>} : vector<8x16xbf16>, vector<16x64xbf16>, vector<8x64xf32> -> vector<8x64xf32>
    %c0_3 = arith.constant 0 : index
    %c0_4 = arith.constant 0 : index
    %4 = vector.load %arg3[%c0_3, %c0_4] : memref<1x64xf32, #tpu.memory_space<vmem>>, vector<1x64xf32>
    %5 = vector.broadcast %4 : vector<1x64xf32> to vector<8x64xf32>
    %6 = arith.addf %3, %5 : vector<8x64xf32>
    %cst_5 = arith.constant 0.000000e+00 : f32
    %7 = vector.broadcast %cst_5 : f32 to vector<8x64xf32>
    %8 = arith.maximumf %6, %7 : vector<8x64xf32>
    %9 = arith.truncf %8 : vector<8x64xf32> to vector<8x64xbf16>
    %c0_6 = arith.constant 0 : index
    %c0_7 = arith.constant 0 : index
    %10 = vector.load %arg4[%c0_6, %c0_7] : memref<64x64xbf16, #tpu.memory_space<vmem>>, vector<64x64xbf16>
    %cst_8 = arith.constant dense<0.000000e+00> : vector<8x64xf32>
    %11 = tpu.matmul %9, %10, %cst_8 {dimension_numbers = #tpu.dot_dimension_numbers<[1], [0], [0], [1], [0, 0, 1, 1], [], []>} : vector<8x64xbf16>, vector<64x64xbf16>, vector<8x64xf32> -> vector<8x64xf32>
    %c0_9 = arith.constant 0 : index
    %c0_10 = arith.constant 0 : index
    %12 = vector.load %arg5[%c0_9, %c0_10] : memref<1x64xf32, #tpu.memory_space<vmem>>, vector<1x64xf32>
    %13 = vector.broadcast %12 : vector<1x64xf32> to vector<8x64xf32>
    %14 = arith.addf %11, %13 : vector<8x64xf32>
    %cst_11 = arith.constant 0.000000e+00 : f32
    %15 = vector.broadcast %cst_11 : f32 to vector<8x64xf32>
    %16 = arith.maximumf %14, %15 : vector<8x64xf32>
    %17 = arith.truncf %16 : vector<8x64xf32> to vector<8x64xbf16>
    %c0_12 = arith.constant 0 : index
    %c0_13 = arith.constant 0 : index
    %18 = vector.load %arg6[%c0_12, %c0_13] : memref<64x128xbf16, #tpu.memory_space<vmem>>, vector<64x128xbf16>
    %cst_14 = arith.constant dense<0.000000e+00> : vector<8x128xf32>
    %19 = tpu.matmul %17, %18, %cst_14 {dimension_numbers = #tpu.dot_dimension_numbers<[1], [0], [0], [1], [0, 0, 1, 1], [], []>} : vector<8x64xbf16>, vector<64x128xbf16>, vector<8x128xf32> -> vector<8x128xf32>
    %c0_15 = arith.constant 0 : index
    %c0_16 = arith.constant 0 : index
    %20 = vector.load %arg7[%c0_15, %c0_16] : memref<1x128xf32, #tpu.memory_space<vmem>>, vector<1x128xf32>
    %21 = vector.broadcast %20 : vector<1x128xf32> to vector<8x128xf32>
    %22 = arith.addf %19, %21 : vector<8x128xf32>
    %23 = vector.extract_strided_slice %22 {offsets = [0, 0], sizes = [8, 8], strides = [1, 1]} : vector<8x128xf32> to vector<8x8xf32>
    %c0_17 = arith.constant 0 : index
    %c0_18 = arith.constant 0 : index
    %24 = vector.load %arg10[%c0_17, %c0_18] : memref<8x8xf32, #tpu.memory_space<vmem>>, vector<8x8xf32>
    tpu.vector_store %arg10[%c0_17, %c0_18], %23 {strides = array<i32>} : memref<8x8xf32, #tpu.memory_space<vmem>>, vector<8x8xf32>,
    %cst_19 = arith.constant 0.000000e+00 : f32
    %25 = vector.broadcast %cst_19 : f32 to vector<8x128xf32>
    %26 = arith.maximumf %22, %25 : vector<8x128xf32>
    %c0_20 = arith.constant 0 : index
    %c0_21 = arith.constant 0 : index
    %27 = vector.load %arg8[%c0_20, %c0_21] : memref<1x128xf32, #tpu.memory_space<vmem>>, vector<1x128xf32>
    %28 = vector.broadcast %27 : vector<1x128xf32> to vector<8x128xf32>
    %29 = arith.mulf %26, %28 : vector<8x128xf32>
    %cst_22 = arith.constant dense<0.000000e+00> : vector<8xf32>
    %30 = vector.multi_reduction <add>, %29, %cst_22 [1] : vector<8x128xf32> to vector<8xf32>
    %31 = vector.shape_cast %30 : vector<8xf32> to vector<8x1xf32>
    %c0_23 = arith.constant 0 : index
    %c0_24 = arith.constant 0 : index
    %32 = vector.load %arg9[%c0_23, %c0_24] : memref<1x1xf32, #tpu.memory_space<vmem>>, vector<1x1xf32>
    %33 = vector.broadcast %32 : vector<1x1xf32> to vector<8x1xf32>
    %34 = arith.addf %31, %33 : vector<8x1xf32>
    %c0_25 = arith.constant 0 : index
    %c0_26 = arith.constant 0 : index
    %35 = vector.load %arg11[%c0_25, %c0_26] : memref<8x1xf32, #tpu.memory_space<vmem>>, vector<8x1xf32>
    tpu.vector_store %arg11[%c0_25, %c0_26], %34 {strides = array<i32>} : memref<8x1xf32, #tpu.memory_space<vmem>>, vector<8x1xf32>,
    return
  }
  func.func @transform_0(%arg0: i32) -> (i32, i32) {
    %c0_i32 = arith.constant 0 : i32
    %c0_i32_0 = arith.constant 0 : i32
    return %arg0, %c0_i32 : i32, i32
  }
  func.func @transform_1(%arg0: i32) -> (i32, i32) {
    %c0_i32 = arith.constant 0 : i32
    %c0_i32_0 = arith.constant 0 : i32
    %c0_i32_1 = arith.constant 0 : i32
    return %c0_i32, %c0_i32_0 : i32, i32
  }
  func.func @transform_2(%arg0: i32) -> (i32, i32) {
    %c0_i32 = arith.constant 0 : i32
    %c0_i32_0 = arith.constant 0 : i32
    %c0_i32_1 = arith.constant 0 : i32
    return %c0_i32, %c0_i32_0 : i32, i32
  }
  func.func @transform_3(%arg0: i32) -> (i32, i32) {
    %c0_i32 = arith.constant 0 : i32
    %c0_i32_0 = arith.constant 0 : i32
    %c0_i32_1 = arith.constant 0 : i32
    return %c0_i32, %c0_i32_0 : i32, i32
  }
  func.func @transform_4(%arg0: i32) -> (i32, i32) {
    %c0_i32 = arith.constant 0 : i32
    %c0_i32_0 = arith.constant 0 : i32
    %c0_i32_1 = arith.constant 0 : i32
    return %c0_i32, %c0_i32_0 : i32, i32
  }
  func.func @transform_5(%arg0: i32) -> (i32, i32) {
    %c0_i32 = arith.constant 0 : i32
    %c0_i32_0 = arith.constant 0 : i32
    %c0_i32_1 = arith.constant 0 : i32
    return %c0_i32, %c0_i32_0 : i32, i32
  }
  func.func @transform_6(%arg0: i32) -> (i32, i32) {
    %c0_i32 = arith.constant 0 : i32
    %c0_i32_0 = arith.constant 0 : i32
    %c0_i32_1 = arith.constant 0 : i32
    return %c0_i32, %c0_i32_0 : i32, i32
  }
  func.func @transform_7(%arg0: i32) -> (i32, i32) {
    %c0_i32 = arith.constant 0 : i32
    %c0_i32_0 = arith.constant 0 : i32
    %c0_i32_1 = arith.constant 0 : i32
    return %c0_i32, %c0_i32_0 : i32, i32
  }
  func.func @transform_8(%arg0: i32) -> (i32, i32) {
    %c0_i32 = arith.constant 0 : i32
    %c0_i32_0 = arith.constant 0 : i32
    %c0_i32_1 = arith.constant 0 : i32
    return %c0_i32, %c0_i32_0 : i32, i32
  }
  func.func @transform_9(%arg0: i32) -> (i32, i32) {
    %c0_i32 = arith.constant 0 : i32
    %c0_i32_0 = arith.constant 0 : i32
    return %arg0, %c0_i32 : i32, i32
  }
  func.func @transform_10(%arg0: i32) -> (i32, i32) {
    %c0_i32 = arith.constant 0 : i32
    %c0_i32_0 = arith.constant 0 : i32
    return %arg0, %c0_i32 : i32, i32
  }
}

</mosaic_0001>

<bundles_post_ra>
// kernel: actor_critic_forward.1
= control target key start
LH: loop header
LB: loop body
LE: loop exit
PB: predicated region body
PF: predicated region fallthrough
CT: control target
= control target key end

     0   :  { %s717_s0 = inlined_call_operand.vmem [shape: f32[8,16], index: 0, kind: input, shape index: {}]   ;;  %s718_s1 = inlined_call_operand.vmem [shape: bf16[16,64], index: 1, kind: input, shape index: {}]   ;;  %s719_s2 = inlined_call_operand.hbm [shape: f32[1,64], index: 2, kind: input, shape index: {}]   ;;  %s720_s3 = inlined_call_operand.hbm [shape: bf16[64,64], index: 3, kind: input, shape index: {}]   ;;  %s721_s4 = inlined_call_operand.hbm [shape: f32[1,64], index: 4, kind: input, shape index: {}]   ;;  %s722_s5 = inlined_call_operand.hbm [shape: bf16[64,128], index: 5, kind: input, shape index: {}]   ;;  %s723_s6 = inlined_call_operand.hbm [shape: f32[1,128], index: 6, kind: input, shape index: {}]   ;;  %s724_s7 = inlined_call_operand.hbm [shape: f32[1,128], index: 7, kind: input, shape index: {}]   ;;  %s725_s8 = inlined_call_operand.<no memory space> [shape: f32[1,1], index: 8, kind: input, shape index: {}]   ;;  %s726_s9 = inlined_call_operand.hbm [shape: f32[8,8], index: 9, kind: output, shape index: {0}]   ;;  %s727_s10 = inlined_call_operand.vmem [shape: f32[8,1], index: 10, kind: output, shape index: {1}]  }
   0x1   :  { %v16_v0 = vstv %s725_s8 }
   0x2   :  { %17 = vst [vmem:[#allocation2] sm:$0x1] %v16_v0 }
   0x3   :  { %18 = vsyncpa [#allocation4], 0 }
   0x4   :  { %19 = vsyncpa [#allocation7], 0 }
   0x5   :  { %20 = vsyncpa [#allocation10], 0 }
   0x6   :  { %21 = vsyncpa [#allocation13], 0 }
   0x7   :  { %22 = vsyncpa [#allocation5], 0  ;;  %s616_s15 = smov [#allocation6]  }
   0x8   :  { %s42_s16 = sshll.u32 %s616_s15, 4  ;;  %s43_s16 = int_to_ptr.vmem [resolvable:$true] %s42_s16 }
   0x9   :  { %s474_s17 = scalar_lea.vmem %s43_s16, 512  ;;  %p479_p1 = scmp.lt.s32.totalorder %s43_s16, %s43_s16 }
   0xa   :  { %p475_p0 = scmp.ne.s32.totalorder %s43_s16, %s474_s17  ;;  %p480_p2 = scmp.lt.s32.totalorder %s474_s17, %s474_s17 }
   0xc   :  { %p481_p3 = por %p480_p2, %p479_p1 }
   0xe   :  { %p482_p4 = pnand %p481_p3, %p475_p0 }
  0x10   :  { %485 = shalt.err (!%p482_p4)
}
  0x11   :  { %s617_s18 = smov 64   ;;  %s618_s19 = smov 4  }
  0x12   :  { %48 = dma.hbm_to_vmem [thread:$0]  %s720_s3, 512, %s43_s16, [#allocation7], %s617_s18, %s617_s18, %s618_s19  }
  0x13   :  { %s619_s21 = smov [#allocation9]   ;;  %s620_s23 = smov [#allocation3]  }
  0x14   :  { %s64_s22 = sshll.u32 %s619_s21, 4  ;;  %s33_s24 = sshll.u32 %s620_s23, 4  ;;  %s65_s22 = int_to_ptr.vmem [resolvable:$true] %s64_s22  ;;  %s34_s24 = int_to_ptr.vmem [resolvable:$true] %s33_s24 }
  0x15   :  { %s494_s25 = scalar_lea.vmem %s65_s22, 512  ;;  %p499_p6 = scmp.lt.s32.totalorder %s65_s22, %s65_s22 }
  0x16   :  { %p495_p5 = scmp.ne.s32.totalorder %s65_s22, %s494_s25  ;;  %p500_p7 = scmp.lt.s32.totalorder %s494_s25, %s494_s25 }
  0x18   :  { %p501_p8 = por %p500_p7, %p499_p6 }
  0x1a   :  { %p502_p9 = pnand %p501_p8, %p495_p5 }
  0x1c   :  { %505 = shalt.err (!%p502_p9)
}
  0x1d   :  { %70 = dma.hbm_to_vmem [thread:$0]  %s722_s5, 512, %s65_s22, [#allocation10], %s617_s18, %s617_s18, %s618_s19  }
  0x1e   :  { %s514_s28 = scalar_lea.vmem %s34_s24, 16  ;;  %s518_s3 = scalar_lea.vmem %s34_s24, 32 }
  0x1f   :  { %p515_p10 = scmp.ne.s32.totalorder %s34_s24, %s514_s28  ;;  %p519_p11 = scmp.lt.s32.totalorder %s34_s24, %s34_s24 }
  0x20   :  { %p520_p12 = scmp.lt.s32.totalorder %s518_s3, %s514_s28 }
  0x22   :  { %p521_p13 = por %p520_p12, %p519_p11 }
  0x24   :  { %p522_p0 = pnand %p521_p13, %p515_p10 }
  0x26   :  { %525 = shalt.err (!%p522_p0)
}
  0x27   :  { %36 = dma.hbm_to_vmem [thread:$0]  %s719_s2, 16, %s34_s24, [#allocation4]  }
  0x28   :  { %s621_s11 = smov [#allocation8]   ;;  %s622_s13 = smov [#allocation11]  }
  0x29   :  { %s55_s12 = sshll.u32 %s621_s11, 4  ;;  %s77_s14 = sshll.u32 %s622_s13, 4  ;;  %s56_s12 = int_to_ptr.vmem [resolvable:$true] %s55_s12  ;;  %s78_s14 = int_to_ptr.vmem [resolvable:$true] %s77_s14 }
  0x2a   :  { %s534_s15 = scalar_lea.vmem %s56_s12, 16  ;;  %s538_s5 = scalar_lea.vmem %s56_s12, 32 }
  0x2b   :  { %p535_p1 = scmp.ne.s32.totalorder %s56_s12, %s534_s15  ;;  %p539_p2 = scmp.lt.s32.totalorder %s56_s12, %s56_s12 }
  0x2c   :  { %p540_p3 = scmp.lt.s32.totalorder %s538_s5, %s534_s15 }
  0x2e   :  { %p541_p4 = por %p540_p3, %p539_p2 }
  0x30   :  { %p542_p5 = pnand %p541_p4, %p535_p1 }
  0x32   :  { %545 = shalt.err (!%p542_p5)
}
  0x33   :  { %58 = dma.hbm_to_vmem [thread:$0]  %s721_s4, 16, %s56_s12, [#allocation7]  }
  0x34   :  { %s554_s18 = scalar_lea.vmem %s78_s14, 16  ;;  %s558_s2 = scalar_lea.vmem %s78_s14, 32 }
  0x35   :  { %p555_p6 = scmp.ne.s32.totalorder %s78_s14, %s554_s18  ;;  %p559_p7 = scmp.lt.s32.totalorder %s78_s14, %s78_s14 }
  0x36   :  { %p560_p8 = scmp.lt.s32.totalorder %s558_s2, %s554_s18 }
  0x38   :  { %p561_p9 = por %p560_p8, %p559_p7 }
  0x3a   :  { %p562_p10 = pnand %p561_p9, %p555_p6 }
  0x3c   :  { %565 = shalt.err (!%p562_p10)
}
  0x3d   :  { %80 = dma.hbm_to_vmem [thread:$0]  %s723_s6, 16, %s78_s14, [#allocation10]  }
  0x3e   :  { %s623_s8 = smov [#allocation12]  }
  0x3f   :  { %s87_s21 = sshll.u32 %s623_s8, 4  ;;  %s88_s21 = int_to_ptr.vmem [resolvable:$true] %s87_s21 }
  0x40   :  { %s574_s22 = scalar_lea.vmem %s88_s21, 16  ;;  %s578_s23 = scalar_lea.vmem %s88_s21, 32 }
  0x41   :  { %p575_p11 = scmp.ne.s32.totalorder %s88_s21, %s574_s22  ;;  %p579_p12 = scmp.lt.s32.totalorder %s88_s21, %s88_s21 }
  0x42   :  { %p580_p13 = scmp.lt.s32.totalorder %s578_s23, %s574_s22 }
  0x44   :  { %p581_p0 = por %p580_p13, %p579_p12 }
  0x46   :  { %p582_p1 = pnand %p581_p0, %p575_p11 }
  0x48   :  { %585 = shalt.err (!%p582_p1)
}
  0x49   :  { %90 = dma.hbm_to_vmem [thread:$0]  %s724_s7, 16, %s88_s21, [#allocation13]  }
  0x4a   :  { %606 = dma.done.wait [#allocation4], 16  }
  0x4b   :  { %607 = vsyncadd [#allocation4], 4294967280 }
  0x4c   :  { %608 = dma.done.wait [#allocation7], 528  }
  0x4d   :  { %609 = vsyncadd [#allocation7], 4294966768 }
  0x4e   :  { %610 = dma.done.wait [#allocation10], 528  }
  0x4f   :  { %611 = vsyncadd [#allocation10], 4294966768 }
  0x50   :  { %612 = dma.done.wait [#allocation13], 16  }
  0x51   :  { %613 = vsyncadd [#allocation13], 4294967280  ;;  %v624_v1 = vmov 0.0   ;;  %vm625_vm0 = vmmov 0   ;;  %v457_v2 = vld [vmem:[%s718_s1] sm:$0xff]   ;;  %vm129_vm1 = vcmask 130048  }
  0x52   :  { %416 = vmatprep.subr.bf16.mxu0 %v624_v1  ;;  %418 = vmatprep.mubr.msk.bf16.mxu0 %vm625_vm0, %v624_v1  ;;  %v112_v3 = vld [vmem:[%s717_s0] sm:$0xff]  ;;  %v459_v6 = vld [vmem:[#allocation6 + $0x10] sm:$0xff]   ;;  %v460_v7 = vld [vmem:[#allocation6 + $0x8] sm:$0xff]   ;;  %vm214_vm2 = vcmask 523264   ;;  %vm342_vm3 = vcmask 64512   ;;  %s626_s0 = smov [#allocation14]  }
  0x53   :  { %422 = vmatprep.subr.bf16.mxu1 %v624_v1  ;;  %430 = vmatprep.mubr.msk.bf16.mxu1 %vm625_vm0, %v624_v1  ;;  %v113_v4 = vpack.c.bf16 %v112_v3, %v112_v3  ;;  %v458_v5 = vld [vmem:[#allocation6 + $0x18] sm:$0xff]   ;;  %v461_v8 = vld [vmem:[#allocation6] sm:$0xff]   ;;  %v464_v19 = vld [vmem:[#allocation9 + $0x8] sm:$0xff]   ;;  %s371_s1 = sshll.u32 %s626_s0, 4  ;;  %s372_s1 = int_to_ptr.vmem [resolvable:$true] %s371_s1 }
  0x54   :  { %417 = vmatpush3.bf16.msra.mxu0 %v457_v2  ;;  %423 = vmatpush3.bf16.msra.mxu1 %v458_v5  ;;  %v462_v9 = vld [vmem:[#allocation9 + $0x18] sm:$0xff]   ;;  %v463_v10 = vld [vmem:[#allocation9 + $0x10] sm:$0xff]   ;;  %v465_v20 = vld [vmem:[#allocation9] sm:$0xff]   ;;  %s586_s27 = scalar_lea.vmem %s372_s1, 128  ;;  %p591_p3 = scmp.lt.s32.totalorder %s372_s1, %s372_s1 }
  0x55   :  { %434 = vmatprep.subr.bf16.mxu0 %v624_v1  ;;  %424 = vmatprep.subr.bf16.mxu1 %v624_v1  ;;  %v387_v11 = vld [vmem:[#allocation3] ss:$0 sm:$0xff]  ;;  %v390_v21 = vld [vmem:[#allocation8] ss:$0 sm:$0xff]  ;;  %v396_v29 = vld [vmem:[#allocation11] ss:$0 sm:$0xff]  ;;  %p587_p2 = scmp.ne.s32.totalorder %s372_s1, %s586_s27  ;;  %p592_p4 = scmp.lt.s32.totalorder %s586_s27, %s586_s27 }
  0x56   :  { %v402_v33 = vld [vmem:[#allocation12] ss:$0 sm:$0xff] }
  0x57   :  { %419 = vmatmul.mubr.msk.bf16.vlgmr.msra.gmra.mxu0 %vm129_vm1, %v113_v4  ;;  %p593_p5 = por %p592_p4, %p591_p3 }
  0x58   :  { %442 = vmatprep.mubr.msk.bf16.mxu0 %vm625_vm0, %v624_v1  ;;  %425 = vmatpush3.bf16.msra.mxu1 %v459_v6 }
  0x59   :  { %426 = vmatprep.subr.bf16.mxu1 %v624_v1  ;;  %435 = vmatpush3.bf16.msra.mxu0 %v462_v9  ;;  %p594_p6 = pnand %p593_p5, %p587_p2 }
  0x5a   :  { %436 = vmatprep.subr.bf16.mxu0 %v624_v1 }
  0x5c   :  { %427 = vmatpush3.bf16.msra.mxu1 %v460_v7 }
  0x5d   :  { %428 = vmatprep.subr.bf16.mxu1 %v624_v1  ;;  %437 = vmatpush3.bf16.msra.mxu0 %v463_v10 }
  0x5e   :  { %438 = vmatprep.subr.bf16.mxu0 %v624_v1 }
  0x60   :  { %429 = vmatpush3.bf16.msra.mxu1 %v461_v8 }
  0x61   :  { %439 = vmatpush3.bf16.msra.mxu0 %v464_v19 }
  0x62   :  { %440 = vmatprep.subr.bf16.mxu0 %v624_v1 }
  0x65   :  { %441 = vmatpush3.bf16.msra.mxu0 %v465_v20 }
 0x117   :  { %v167_v12 = vpop.f32.mrf.mxu0 }
 0x118   :  { %v168_v13 = vadd.f32 %v387_v11, %v167_v12 }
 0x119   :  { %v420_v14 = vpop.f32.mrf.mxu0 }
 0x11a   :  { %v173_v15 = vmax.f32 %v168_v13, 0.0 }
 0x11b   :  { %v170_v16 = vpop.f32.mrf.mxu0 }
 0x11c   :  { %v174_v17 = vpack.c.bf16 %v173_v15, %v173_v15 }
 0x11d   :  { %v421_v18 = vpop.f32.mrf.mxu0 }
 0x11e   :  { %431 = vmatmul.mubr.msk.bf16.vlgmr.msra.gmra.mxu1 %vm214_vm2, %v174_v17 }
 0x1de   :  { %v252_v22 = vpop.f32.mrf.mxu1 }
 0x1df   :  { %v253_v23 = vadd.f32 %v390_v21, %v252_v22 }
 0x1e0   :  { %v432_v24 = vpop.f32.mrf.mxu1 }
 0x1e1   :  { %v258_v25 = vmax.f32 %v253_v23, 0.0 }
 0x1e2   :  { %v255_v26 = vpop.f32.mrf.mxu1 }
 0x1e3   :  { %v259_v27 = vpack.c.bf16 %v258_v25, %v258_v25 }
 0x1e4   :  { %v433_v28 = vpop.f32.mrf.mxu1 }
 0x1e5   :  { %443 = vmatmul.mubr.msk.bf16.vlgmr.msra.gmra.mxu0 %vm214_vm2, %v259_v27 }
 0x2a5   :  { %v336_v30 = vpop.f32.mrf.mxu0 }
 0x2a6   :  { %v337_v31 = vadd.f32 %v396_v29, %v336_v30 }
 0x2a7   :  { %v444_v32 = vpop.f32.mrf.mxu0 }
 0x2a8   :  { %v344_v34 = vmax.f32 %v337_v31, 0.0  ;;  %343 = vst.msk [vmem:[#allocation14] sm:$0xff] %vm342_vm3, %v337_v31 }
 0x2a9   :  { %v339_v35 = vpop.f32.mrf.mxu0 }
 0x2aa   :  { %v352_v36 = vmul.f32 %v402_v33, %v344_v34 }
 0x2ab   :  { %v445_v37 = vpop.f32.mrf.mxu0 }
 0x2ac   :  { %353 = vadd.xlane.f32.xlu0 %v352_v36 }
 0x2ad   :  { %597 = shalt.err (!%p594_p6)
}
 0x2ae   :  { %374 = dma.vmem_to_hbm [thread:$0]  %s372_s1, 128, %s726_s9, [#allocation5]   ;;  %v403_v38 = vld [vmem:[#allocation2] ss:$0 sm:$0xff]  ;;  %vm363_vm4 = vcmask 7168  }
 0x335   :  { %v354_v39 = vpop.xlane.xlu0 %353 }
 0x336   :  { %v362_v40 = vadd.f32 %v403_v38, %v354_v39 }
 0x338   :  { %364 = vst.msk [vmem:[%s727_s10] sm:$0xff] %vm363_vm4, %v362_v40 }
 0x339   :  { %614 = dma.done.wait [#allocation5], 128  }
 0x33a   :  { %615 = vsyncadd [#allocation5], 4294967168 }
 0x33b   :  { %382 = vsyncpa [#allocation4], 1 }
 0x33c   :  { %383 = vsyncpa [#allocation7], 1 }
 0x33d   :  { %384 = vsyncpa [#allocation10], 1 }
 0x33e   :  { %385 = vsyncpa [#allocation13], 1 }
 0x33f   :  { %386 = vsyncpa [#allocation5], 1 }

</bundles_post_ra>
